<compile_context>
chip_gen: v7x
topology: tpu7x:2x2x1
jax: 0.10.0
libtpu: 0.0.40
codegen_flags: <defaults>
</compile_context>

<pallas_src>
import functools

import jax
import jax.numpy as jnp
from jax.experimental import pallas as pl
from jax.experimental.pallas import tpu as pltpu

PACK = 8  # batch rows packed into one lane-dense row (8 * num_params=16 -> 128 lanes)


def _cdiv(a, b):
    return -(-a // b)


def _round_up(x, m):
    return _cdiv(x, m) * m


def _mlp_kernel(x_ref, w1_ref, b1_ref, w2_ref, b2_ref, o_ref):
    """Fused 2-layer MLP on the packed layout.

    x_ref : (tbp, PACK*D)        streamed activations, f32 (cast to matmul dtype here)
    w1_ref: (PACK*D, PACK*H)     block-diagonal replicated W1 (VMEM-resident)
    b1_ref: (1, PACK*H)          tiled bias (f32)
    w2_ref: (PACK*H, PACK*P)     block-diagonal replicated W2 (VMEM-resident)
    b2_ref: (1, PACK*P)          tiled bias (f32)
    o_ref : (tbp, PACK*P)        lane-dense output block
    """
    # Cast the streamed f32 activations to the matmul dtype in-kernel: no extra
    # HBM round trip in the wrapper, MXU still runs on bf16 operands.
    x = x_ref[...].astype(w1_ref.dtype)
    h = jnp.dot(x, w1_ref[...], preferred_element_type=jnp.float32)
    # Elementwise tail in f32 (v5e VPU/EUP have no bf16 path).
    h = jnp.maximum(h + b1_ref[...], 0.0)
    y = jnp.dot(h.astype(w2_ref.dtype), w2_ref[...], preferred_element_type=jnp.float32)
    y = y + b2_ref[...]
    # Sigmoid with the divide on the EUP approx-reciprocal path (exp is EUP too),
    # freeing VPU slots as the tile grows.
    sig = pl.reciprocal(1.0 + jnp.exp(-y), approx=True)
    o_ref[...] = sig.astype(o_ref.dtype)


def _block_diag(w, k):
    """(din, dout) -> (k*din, k*dout) with w repeated on the block diagonal."""
    din, dout = w.shape
    eye = jnp.eye(k, dtype=w.dtype)
    return (eye[:, None, :, None] * w[None, :, None, :]).reshape(k * din, k * dout)


def pack_params(w1, b1, w2, b2, use_bf16=True):
    """One-time packing of the Linear weights into the kernel's block-diagonal,
    lane-dense layout.  Call ONCE at init and reuse the result for every forward
    call (keeps the weight-prep HBM traffic out of the hot path)."""
    mm_dtype = jnp.bfloat16 if use_bf16 else jnp.float32
    w1_bd = _block_diag(w1.astype(mm_dtype), PACK)                 # (PACK*D, PACK*H)
    w2_bd = _block_diag(w2.astype(mm_dtype), PACK)                 # (PACK*H, PACK*P)
    b1_t = jnp.tile(b1.reshape(1, -1).astype(jnp.float32), (1, PACK))  # (1, PACK*H)
    b2_t = jnp.tile(b2.reshape(1, -1).astype(jnp.float32), (1, PACK))  # (1, PACK*P)

    wbytes = (w1_bd.size * jnp.dtype(w1_bd.dtype).itemsize
              + w2_bd.size * jnp.dtype(w2_bd.dtype).itemsize)
    if wbytes > 8 * 1024 * 1024:
        raise ValueError(
            f"Packed resident weights are {wbytes / 2**20:.1f} MiB; this exceeds the "
            "VMEM budget for the weights-resident design (worst on v7x's 64 MiB VMEM). "
            "Reduce PACK or tile W1's output columns with an extra grid axis.")
    return w1_bd, b1_t, w2_bd, b2_t


def _choose_tiling(Bp, max_tbp, min_steps=4):
    """Pick packed rows per tile (tbp, multiple of 8 sublanes) and the grid step
    count.  Large tiles amortise the ~0.35us per-step overhead; >= min_steps
    steps give each v7x TensorCore >= 2 pipelined iterations; an even step count
    balances the two TCs (only forced when padding is needed anyway, so we never
    introduce a whole-array padding copy just for balance)."""
    tbp = max(8, min(max_tbp, _round_up(_cdiv(Bp, min_steps), 8)))
    steps = _cdiv(Bp, tbp)
    if steps > 1 and steps % 2 == 1 and Bp % tbp != 0:
        steps += 1
    return tbp, steps


@functools.partial(jax.jit, static_argnames=("batch_tile", "out_dtype"))
def parameter_regressor_forward(embed, packed_params, batch_tile=16384,
                                out_dtype=jnp.float32):
    """embed: (B, input_dim) float32.  packed_params: output of pack_params().
    Returns (B, num_params) in [0, 1] with dtype `out_dtype`."""
    w1_bd, b1_t, w2_bd, b2_t = packed_params
    B, D = embed.shape
    PD, PH = w1_bd.shape
    PP = w2_bd.shape[1]
    assert PD == PACK * D, "packed_params do not match embed's input_dim"
    P = PP // PACK
    # Note: the fully lane-dense output store relies on PACK*P being a multiple
    # of 128 (true for num_params=16); other P values fall back to masked stores.

    max_tbp = max(8, batch_tile // PACK)
    tbp, steps = _choose_tiling(_cdiv(B, PACK), max_tbp)
    B_pad = steps * tbp * PACK
    if B_pad != B:
        # Robustness path for ragged / non-tile-multiple batches (costs one copy).
        embed = jnp.pad(embed, ((0, B_pad - B), (0, 0)))
    Bp = B_pad // PACK

    # Lane-dense packing of the batch: contiguous row-major reshape -> free bitcast.
    x_p = embed.reshape(Bp, PACK * D)

    out_p = pl.pallas_call(
        _mlp_kernel,
        out_shape=jax.ShapeDtypeStruct((Bp, PACK * P), out_dtype),
        grid_spec=pltpu.PrefetchScalarGridSpec(
            num_scalar_prefetch=0,
            grid=(steps,),
            in_specs=[
                pl.BlockSpec((tbp, PACK * D), lambda i: (i, 0)),       # x tile (streamed)
                pl.BlockSpec((PACK * D, PH), lambda i: (0, 0)),        # W1 (resident)
                pl.BlockSpec((1, PH), lambda i: (0, 0)),               # b1 (resident)
                pl.BlockSpec((PH, PACK * P), lambda i: (0, 0)),        # W2 (resident)
                pl.BlockSpec((1, PACK * P), lambda i: (0, 0)),         # b2 (resident)
            ],
            out_specs=pl.BlockSpec((tbp, PACK * P), lambda i: (i, 0)),  # lane-dense out
        ),
        compiler_params=pltpu.CompilerParams(
            dimension_semantics=("parallel",),
        ),
    )(x_p, w1_bd, b1_t, w2_bd, b2_t)

    out = out_p.reshape(B_pad, P)
    return out[:B] if B_pad != B else out


def init_params(key, input_dim, num_params):
    """Deterministic init mirroring torch.nn.Linear default:
    U(-1/sqrt(fan_in), 1/sqrt(fan_in)) for weight and bias.
    Weights stored as (in_features, out_features)."""
    hidden = 2 * input_dim
    k1, k2, k3, k4 = jax.random.split(key, 4)
    bound1 = 1.0 / jnp.sqrt(input_dim)
    bound2 = 1.0 / jnp.sqrt(hidden)
    w1 = jax.random.uniform(k1, (input_dim, hidden), jnp.float32, -bound1, bound1)
    b1 = jax.random.uniform(k2, (1, hidden), jnp.float32, -bound1, bound1)
    w2 = jax.random.uniform(k3, (hidden, num_params), jnp.float32, -bound2, bound2)
    b2 = jax.random.uniform(k4, (1, num_params), jnp.float32, -bound2, bound2)
    return w1, b1, w2, b2


if __name__ == "__main__":
    input_dim = 32
    num_params = 16
    batch = 128  # small demo; tiling picks tbp=8 packed rows, grid=(2,)

    key = jax.random.PRNGKey(0)
    k_x, k_p = jax.random.split(key)
    embed = jax.random.normal(k_x, (batch, input_dim), dtype=jnp.float32)
    w1, b1, w2, b2 = init_params(k_p, input_dim, num_params)

    # Pure-JAX reference for sanity checking.
    ref = jax.nn.sigmoid(jnp.maximum(embed @ w1 + b1, 0.0) @ w2 + b2)

    # f32 weights: matches the reference up to the EUP approx-reciprocal.
    packed_f32 = pack_params(w1, b1, w2, b2, use_bf16=False)
    out_f32 = jax.block_until_ready(parameter_regressor_forward(embed, packed_f32))
    assert out_f32.shape == (batch, num_params)
    assert jnp.allclose(out_f32, ref, atol=2e-3)

    # bf16 matmul operands (default packing): f32 accumulation / f32 tail.
    packed_bf16 = pack_params(w1, b1, w2, b2, use_bf16=True)
    out_bf16 = jax.block_until_ready(parameter_regressor_forward(embed, packed_bf16))
    assert out_bf16.shape == (batch, num_params)
    assert jnp.allclose(out_bf16, ref, atol=2e-2)

    # Ragged batch exercises the wrapper padding + output-slice path.
    out_odd = jax.block_until_ready(parameter_regressor_forward(embed[:100], packed_f32))
    assert out_odd.shape == (100, num_params)
    assert jnp.allclose(out_odd, ref[:100], atol=2e-3)

    print("KERNEL_OK")
</pallas_src>

<mosaic_0001>
module attributes {stable_mosaic.version = 11 : i64} {
  func.func @_mlp_kernel(%arg0: i32, %arg1: memref<8x256xf32, #tpu.memory_space<vmem>>, %arg2: memref<256x512xf32, #tpu.memory_space<vmem>>, %arg3: memref<1x512xf32, #tpu.memory_space<vmem>>, %arg4: memref<512x128xf32, #tpu.memory_space<vmem>>, %arg5: memref<1x128xf32, #tpu.memory_space<vmem>>, %arg6: memref<8x128xf32, #tpu.memory_space<vmem>>) attributes {dimension_semantics = [#tpu.dimension_semantics<parallel>], iteration_bounds = array<i64: 2>, scalar_prefetch = 0 : i64, scratch_operands = 0 : i64, tpu.core_type = #tpu.core_type<tc>, window_params = [{transform_indices = @transform_0, window_bounds = array<i64: 8, 256>}, {pipeline_mode = #tpu.pipeline_mode<synchronous>, transform_indices = @transform_1, window_bounds = array<i64: 256, 512>}, {pipeline_mode = #tpu.pipeline_mode<synchronous>, transform_indices = @transform_2, window_bounds = array<i64: 1, 512>}, {pipeline_mode = #tpu.pipeline_mode<synchronous>, transform_indices = @transform_3, window_bounds = array<i64: 512, 128>}, {pipeline_mode = #tpu.pipeline_mode<synchronous>, transform_indices = @transform_4, window_bounds = array<i64: 1, 128>}, {transform_indices = @transform_5, window_bounds = array<i64: 8, 128>}]} {
    %c0 = arith.constant 0 : index
    %c0_0 = arith.constant 0 : index
    %0 = vector.load %arg1[%c0, %c0_0] : memref<8x256xf32, #tpu.memory_space<vmem>>, vector<8x256xf32>
    %c0_1 = arith.constant 0 : index
    %c0_2 = arith.constant 0 : index
    %1 = vector.load %arg2[%c0_1, %c0_2] : memref<256x512xf32, #tpu.memory_space<vmem>>, vector<256x512xf32>
    %cst = arith.constant dense<0.000000e+00> : vector<8x512xf32>
    %2 = tpu.matmul %0, %1, %cst {dimension_numbers = #tpu.dot_dimension_numbers<[1], [0], [0], [1], [0, 0, 1, 1], [], []>} : vector<8x256xf32>, vector<256x512xf32>, vector<8x512xf32> -> vector<8x512xf32>
    %c0_3 = arith.constant 0 : index
    %c0_4 = arith.constant 0 : index
    %3 = vector.load %arg3[%c0_3, %c0_4] : memref<1x512xf32, #tpu.memory_space<vmem>>, vector<1x512xf32>
    %4 = vector.broadcast %3 : vector<1x512xf32> to vector<8x512xf32>
    %5 = arith.addf %2, %4 : vector<8x512xf32>
    %cst_5 = arith.constant 0.000000e+00 : f32
    %6 = vector.broadcast %cst_5 : f32 to vector<8x512xf32>
    %7 = arith.maximumf %5, %6 : vector<8x512xf32>
    %c0_6 = arith.constant 0 : index
    %c0_7 = arith.constant 0 : index
    %8 = vector.load %arg4[%c0_6, %c0_7] : memref<512x128xf32, #tpu.memory_space<vmem>>, vector<512x128xf32>
    %cst_8 = arith.constant dense<0.000000e+00> : vector<8x128xf32>
    %9 = tpu.matmul %7, %8, %cst_8 {dimension_numbers = #tpu.dot_dimension_numbers<[1], [0], [0], [1], [0, 0, 1, 1], [], []>} : vector<8x512xf32>, vector<512x128xf32>, vector<8x128xf32> -> vector<8x128xf32>
    %c0_9 = arith.constant 0 : index
    %c0_10 = arith.constant 0 : index
    %10 = vector.load %arg5[%c0_9, %c0_10] : memref<1x128xf32, #tpu.memory_space<vmem>>, vector<1x128xf32>
    %11 = vector.broadcast %10 : vector<1x128xf32> to vector<8x128xf32>
    %12 = arith.addf %9, %11 : vector<8x128xf32>
    %cst_11 = arith.constant 0.000000e+00 : f32
    %13 = vector.broadcast %cst_11 : f32 to vector<8x128xf32>
    %14 = arith.subf %13, %12 : vector<8x128xf32>
    %15 = math.exp %14 : vector<8x128xf32>
    %cst_12 = arith.constant 1.000000e+00 : f32
    %16 = vector.broadcast %cst_12 : f32 to vector<8x128xf32>
    %17 = arith.addf %16, %15 : vector<8x128xf32>
    %18 = tpu.reciprocal %17 {approx = true} : vector<8x128xf32> -> vector<8x128xf32>
    %c0_13 = arith.constant 0 : index
    %c0_14 = arith.constant 0 : index
    %19 = vector.load %arg6[%c0_13, %c0_14] : memref<8x128xf32, #tpu.memory_space<vmem>>, vector<8x128xf32>
    tpu.vector_store %arg6[%c0_13, %c0_14], %18 {strides = array<i32>} : memref<8x128xf32, #tpu.memory_space<vmem>>, vector<8x128xf32>,
    return
  }
  func.func @transform_0(%arg0: i32) -> (i32, i32) {
    %c0_i32 = arith.constant 0 : i32
    %c0_i32_0 = arith.constant 0 : i32
    return %arg0, %c0_i32 : i32, i32
  }
  func.func @transform_1(%arg0: i32) -> (i32, i32) {
    %c0_i32 = arith.constant 0 : i32
    %c0_i32_0 = arith.constant 0 : i32
    %c0_i32_1 = arith.constant 0 : i32
    return %c0_i32, %c0_i32_0 : i32, i32
  }
  func.func @transform_2(%arg0: i32) -> (i32, i32) {
    %c0_i32 = arith.constant 0 : i32
    %c0_i32_0 = arith.constant 0 : i32
    %c0_i32_1 = arith.constant 0 : i32
    return %c0_i32, %c0_i32_0 : i32, i32
  }
  func.func @transform_3(%arg0: i32) -> (i32, i32) {
    %c0_i32 = arith.constant 0 : i32
    %c0_i32_0 = arith.constant 0 : i32
    %c0_i32_1 = arith.constant 0 : i32
    return %c0_i32, %c0_i32_0 : i32, i32
  }
  func.func @transform_4(%arg0: i32) -> (i32, i32) {
    %c0_i32 = arith.constant 0 : i32
    %c0_i32_0 = arith.constant 0 : i32
    %c0_i32_1 = arith.constant 0 : i32
    return %c0_i32, %c0_i32_0 : i32, i32
  }
  func.func @transform_5(%arg0: i32) -> (i32, i32) {
    %c0_i32 = arith.constant 0 : i32
    %c0_i32_0 = arith.constant 0 : i32
    return %arg0, %c0_i32 : i32, i32
  }
}

</mosaic_0001>

<bundles_post_ra>
// kernel: parameter_regressor_forward.1
= control target key start
LH: loop header
LB: loop body
LE: loop exit
PB: predicated region body
PF: predicated region fallthrough
CT: control target
= control target key end

     0   :  { %10 = vsyncpa [#allocation3], 0  ;;  %s1375_s0 = inlined_call_operand.vmem [shape: f32[16,256], index: 0, kind: input, shape index: {}]   ;;  %s1376_s1 = inlined_call_operand.hbm [shape: f32[256,512], index: 1, kind: input, shape index: {}]   ;;  %s1377_s2 = inlined_call_operand.vmem [shape: f32[1,512], index: 2, kind: input, shape index: {}]   ;;  %s1378_s3 = inlined_call_operand.hbm [shape: f32[512,128], index: 3, kind: input, shape index: {}]   ;;  %s1379_s4 = inlined_call_operand.vmem [shape: f32[1,128], index: 4, kind: input, shape index: {}]   ;;  %s1380_s5 = inlined_call_operand.vmem [shape: f32[16,128], index: 5, kind: output, shape index: {}]  }
   0x1   :  { %11 = vsyncpa [#allocation5], 0  ;;  %s1266_s18 = smov 0  }
   0x2 LB: > { %s1230_s19 = smov [#allocation2]   ;;  %s1272_s21 = sadd.s32 4294967295, %s1228_s18   ;;  %s1228_s18 = sphi %s1266_s18, %s17_s18  }
   0x3   : > { %s170_s20 = sshll.u32 %s1230_s19, 4  ;;  %p845_p0 = scmp.ge.s32.totalorder %s1228_s18, 1  ;;  %s171_s20 = int_to_ptr.vmem [resolvable:$true] %s170_s20 }
   0x4   : > { %p158_p1 = scmp.lt.s32.totalorder %s1228_s18, 3  ;;  %p1381_p3 = scmp.eq.s32.totalorder %s1272_s21, 0 }
   0x5   : > { %s1231_s23 = smov [#allocation4]   ;;  %s1158_s28 = scalar_lea.hbm %s1376_s1, 16384 }
   0x6   : > { %p1276_p2 = pnand %p845_p0, %p158_p1  ;;  %s186_s24 = sshll.u32 %s1231_s23, 4  ;;  %s1289_s24 = int_to_ptr.vmem [resolvable:$true] %s186_s24 }
   0x7   : > { %p1159_p6 = scmp.ne.s32.totalorder %s1376_s1, %s1158_s28  ;;  %p1165_p10 = scmp.lt.u32.totalorder %s1158_s28, %s1376_s1 }
   0x8   : > { %s1383_s22 = scalar_select %p1276_p2, 1, 0 }
   0x9   : > { %p1129_p4 = pneg %p1276_p2 }
   0xb   : > { %p1285_p5 = pnand %p1381_p3, %p1129_p4 }
   0xd   : > { %p1160_p7 = pneg %p1285_p5 }
   0xf   : > { %p1161_p8 = pnand %p1160_p7, %p1159_p6 }
  0x11   : > { %p1162_p9 = pneg %p1161_p8 }
  0x13   : > { %p1167_p11 = pnand %p1165_p10, %p1162_p9 }
  0x15   : > { %1170 = shalt.err (!%p1167_p11)
}
  0x16   : > { %s1171_s8 = scalar_lea.vmem %s171_s20, 16384  ;;  %p1179_p1 = scmp.lt.s32.totalorder %s171_s20, %s171_s20 }
  0x17   : > { %p1172_p12 = scmp.ne.s32.totalorder %s171_s20, %s1171_s8  ;;  %p1180_p4 = scmp.lt.s32.totalorder %s1171_s8, %s1171_s8 }
  0x19   : > { %p1174_p13 = pnand %p1172_p12, %p1160_p7  ;;  %p1181_p3 = por %p1180_p4, %p1179_p1 }
  0x1b   : > { %p1175_p0 = pneg %p1174_p13 }
  0x1d   : > { %p1182_p2 = pnand %p1181_p3, %p1175_p0 }
  0x1f   : > { %1185 = shalt.err (!%p1182_p2)
}
  0x20   : > { %s1232_s9 = smov 512   ;;  %s1233_s10 = smov 32  }
  0x21   : > { %1132 = dma.hbm_to_vmem [thread:$0]  (!%p1285_p5), %s1376_s1, 16384, %s171_s20, [#allocation3], %s1232_s9, %s1232_s9, %s1233_s10  }
  0x22   : > { %s1186_s15 = scalar_lea.hbm %s1378_s3, 8192 }
  0x23   : > { %p1187_p6 = scmp.ne.s32.totalorder %s1378_s3, %s1186_s15  ;;  %p1193_p8 = scmp.lt.u32.totalorder %s1186_s15, %s1378_s3 }
  0x25   : > { %p1189_p2 = pnand %p1187_p6, %p1160_p7 }
  0x27   : > { %p1190_p3 = pneg %p1189_p2 }
  0x29   : > { %p1195_p9 = pnand %p1193_p8, %p1190_p3 }
  0x2b   : > { %1198 = shalt.err (!%p1195_p9)
}
  0x2c   : > { %s1199_s20 = scalar_lea.vmem %s1289_s24, 8192  ;;  %p1207_p13 = scmp.lt.s32.totalorder %s1289_s24, %s1289_s24 }
  0x2d   : > { %p1200_p10 = scmp.ne.s32.totalorder %s1289_s24, %s1199_s20  ;;  %p1208_p0 = scmp.lt.s32.totalorder %s1199_s20, %s1199_s20 }
  0x2f   : > { %p1202_p11 = pnand %p1200_p10, %p1160_p7  ;;  %p1209_p1 = por %p1208_p0, %p1207_p13 }
  0x31   : > { %p1203_p12 = pneg %p1202_p11 }
  0x33   : > { %p1210_p4 = pnand %p1209_p1, %p1203_p12 }
  0x35   : > { %1213 = shalt.err (!%p1210_p4)
}
  0x36   : > { %s1234_s26 = smov 128   ;;  %s1235_s27 = smov 8  }
  0x37   : > { %1135 = dma.hbm_to_vmem [thread:$0]  (!%p1285_p5), %s1378_s3, 8192, %s1289_s24, [#allocation5], %s1234_s26, %s1234_s26, %s1235_s27  }
  0x38   : > { %p1385_p6 = scmp.ne.s32.totalorder %s1383_s22, 0 }
  0x39   : > { %p1386_p7 = scmp.eq.s32.totalorder (!%p1385_p6), %s1272_s21, 0 }
  0x3a   : > { %213 = sbr.rel (%p1385_p6) target bundleno = 604 (0x25c), region = 40 }
  0x41   : > { %1219 = dma.done.wait (%p1386_p7), [#allocation3], 16384   ;;  %p1387_p2 = pmov %p1386_p7 }
  0x43   : > { %1221 = vsyncadd (%p1387_p2), [#allocation3], 4294950912  ;;  %p1388_p3 = pmov %p1387_p2 }
  0x44   : > { %p1389_p8 = pmov %p1387_p2 }
  0x45   : > { %1223 = dma.done.wait (%p1388_p3), [#allocation5], 8192  }
  0x46   : > { %1225 = vsyncadd (%p1389_p8), [#allocation5], 4294959104  ;;  %v256_v0 = vld [vmem:[#allocation2 + $0x8] sm:$0xff]  ;;  %v258_v2 = vld [vmem:[#allocation2 + $0x18] sm:$0xff]  ;;  %p244_p5 = scmp.lt.s32.totalorder %s1272_s21, 1 }
  0x47   : > { %v260_v1 = vld [vmem:[#allocation2 + $0x28] sm:$0xff]  ;;  %v262_v4 = vld [vmem:[#allocation2 + $0x38] sm:$0xff]  ;;  %v255_v5 = vld [vmem:[#allocation2] sm:$0xff] }
  0x48   : > { %v929_v3 = vpack.c.bf16 %v260_v1, %v256_v0  ;;  %v259_v6 = vld [vmem:[#allocation2 + $0x20] sm:$0xff]  ;;  %v993_v7 = vpack.c.bf16 %v262_v4, %v258_v2  ;;  %v257_v9 = vld [vmem:[#allocation2 + $0x10] sm:$0xff]  ;;  %v264_v11 = vld [vmem:[#allocation2 + $0x48] sm:$0xff]  ;;  %s1391_s21 = smov (!%p244_p5, %s1272_s21), 1 }
  0x49   : > { %v931_v8 = vpack.c.bf16 %v259_v6, %v255_v5  ;;  %v261_v10 = vld [vmem:[#allocation2 + $0x30] sm:$0xff]  ;;  %v268_v13 = vld [vmem:[#allocation2 + $0x68] sm:$0xff]  ;;  %v266_v14 = vld [vmem:[#allocation2 + $0x58] sm:$0xff]  ;;  %s858_s22 = sshll.u32 %s1391_s21, 4  ;;  %s854_s10 = sshll.u32 %s1391_s21, 3 }
  0x4a   : > { %930 = vmatprep.subr.bf16.mxu0 %v929_v3  ;;  %v995_v12 = vpack.c.bf16 %v261_v10, %v257_v9  ;;  %v270_v15 = vld [vmem:[#allocation2 + $0x78] sm:$0xff]  ;;  %994 = vmatprep.subr.bf16.mxu1 %v993_v7  ;;  %v933_v16 = vpack.c.bf16 %v268_v13, %v264_v11  ;;  %v263_v18 = vld [vmem:[#allocation2 + $0x40] sm:$0xff]  ;;  %v265_v20 = vld [vmem:[#allocation2 + $0x50] sm:$0xff]  ;;  %s1358_s30 = scalar_lea.vmem %s1375_s0, %s858_s22  ;;  %s252_s13 = scalar_lea.vmem %s1380_s5, %s854_s10 }
  0x4b   : > { %932 = vmatpush1.bf16.msra.mxu0 %v931_v8  ;;  %v997_v17 = vpack.c.bf16 %v270_v15, %v266_v14  ;;  %v267_v19 = vld [vmem:[#allocation2 + $0x60] sm:$0xff]  ;;  %v269_v22 = vld [vmem:[#allocation2 + $0x70] sm:$0xff]  ;;  %v272_v23 = vld [vmem:[#allocation2 + $0x88] sm:$0xff] }
  0x4c   : > { %996 = vmatpush1.bf16.msra.mxu1 %v995_v12  ;;  %v935_v21 = vpack.c.bf16 %v267_v19, %v263_v18  ;;  %v276_v24 = vld [vmem:[#allocation2 + $0xa8] sm:$0xff]  ;;  %934 = vmatprep.subr.bf16.mxu0 %v933_v16  ;;  %v999_v25 = vpack.c.bf16 %v269_v22, %v265_v20  ;;  %v274_v27 = vld [vmem:[#allocation2 + $0x98] sm:$0xff]  ;;  %v271_v29 = vld [vmem:[#allocation2 + $0x80] sm:$0xff] }
  0x4d   : > { %998 = vmatprep.subr.bf16.mxu1 %v997_v17  ;;  %v937_v26 = vpack.c.bf16 %v276_v24, %v272_v23  ;;  %v278_v28 = vld [vmem:[#allocation2 + $0xb8] sm:$0xff]  ;;  %v275_v31 = vld [vmem:[#allocation2 + $0xa0] sm:$0xff]  ;;  %v273_v32 = vld [vmem:[#allocation2 + $0x90] sm:$0xff] }
  0x4e   : > { %v1001_v30 = vpack.c.bf16 %v278_v28, %v274_v27  ;;  %v277_v33 = vld [vmem:[#allocation2 + $0xb0] sm:$0xff]  ;;  %v939_v34 = vpack.c.bf16 %v275_v31, %v271_v29  ;;  %v280_v35 = vld [vmem:[#allocation2 + $0xc8] sm:$0xff]  ;;  %v282_v37 = vld [vmem:[#allocation2 + $0xd8] sm:$0xff] }
  0x4f   : > { %936 = vmatpush1.bf16.msra.mxu0 %v935_v21  ;;  %v284_v36 = vld [vmem:[#allocation2 + $0xe8] sm:$0xff]  ;;  %v1003_v38 = vpack.c.bf16 %v277_v33, %v273_v32  ;;  %v286_v40 = vld [vmem:[#allocation2 + $0xf8] sm:$0xff]  ;;  %v279_v41 = vld [vmem:[#allocation2 + $0xc0] sm:$0xff] }
  0x50   : > { %1000 = vmatpush1.bf16.msra.mxu1 %v999_v25  ;;  %938 = vmatprep.subr.bf16.mxu0 %v937_v26  ;;  %v941_v39 = vpack.c.bf16 %v284_v36, %v280_v35  ;;  %v283_v42 = vld [vmem:[#allocation2 + $0xe0] sm:$0xff]  ;;  %v1005_v43 = vpack.c.bf16 %v286_v40, %v282_v37  ;;  %v281_v44 = vld [vmem:[#allocation2 + $0xd0] sm:$0xff]  ;;  %v288_v46 = vld [vmem:[#allocation2 + $0x108] sm:$0xff] }
  0x51   : > { %1002 = vmatprep.subr.bf16.mxu1 %v1001_v30  ;;  %v285_v45 = vld [vmem:[#allocation2 + $0xf0] sm:$0xff]  ;;  %v292_v47 = vld [vmem:[#allocation2 + $0x128] sm:$0xff]  ;;  %v290_v48 = vld [vmem:[#allocation2 + $0x118] sm:$0xff]  ;;  %v943_v50 = vpack.c.bf16 %v283_v42, %v279_v41 }
  0x52   : > { %v294_v49 = vld [vmem:[#allocation2 + $0x138] sm:$0xff]  ;;  %v1007_v51 = vpack.c.bf16 %v285_v45, %v281_v44  ;;  %v945_v52 = vpack.c.bf16 %v292_v47, %v288_v46  ;;  %v287_v53 = vld [vmem:[#allocation2 + $0x100] sm:$0xff]  ;;  %v289_v55 = vld [vmem:[#allocation2 + $0x110] sm:$0xff] }
  0x53   : > { %940 = vmatpush1.bf16.msra.mxu0 %v939_v34  ;;  %v291_v54 = vld [vmem:[#allocation2 + $0x120] sm:$0xff]  ;;  %v1009_v56 = vpack.c.bf16 %v294_v49, %v290_v48  ;;  %v293_v57 = vld [vmem:[#allocation2 + $0x130] sm:$0xff]  ;;  %v296_v58 = vld [vmem:[#allocation2 + $0x148] sm:$0xff] }
  0x54   : > { %1004 = vmatpush1.bf16.msra.mxu1 %v1003_v38  ;;  %942 = vmatprep.subr.bf16.mxu0 %v941_v39  ;;  %v300_v59 = vld [vmem:[#allocation2 + $0x168] sm:$0xff]  ;;  %v298_v60 = vld [vmem:[#allocation2 + $0x158] sm:$0xff]  ;;  %v947_v62 = vpack.c.bf16 %v291_v54, %v287_v53  ;;  %v1011_v63 = vpack.c.bf16 %v293_v57, %v289_v55  ;;  %v295_v1 = vld [vmem:[#allocation2 + $0x140] sm:$0xff] }
  0x55   : > { %1006 = vmatprep.subr.bf16.mxu1 %v1005_v43  ;;  %v302_v61 = vld [vmem:[#allocation2 + $0x178] sm:$0xff]  ;;  %v949_v0 = vpack.c.bf16 %v300_v59, %v296_v58  ;;  %v299_v2 = vld [vmem:[#allocation2 + $0x160] sm:$0xff]  ;;  %v297_v3 = vld [vmem:[#allocation2 + $0x150] sm:$0xff] }
  0x56   : > { %v1013_v4 = vpack.c.bf16 %v302_v61, %v298_v60  ;;  %v301_v5 = vld [vmem:[#allocation2 + $0x170] sm:$0xff]  ;;  %v304_v6 = vld [vmem:[#allocation2 + $0x188] sm:$0xff]  ;;  %v306_v8 = vld [vmem:[#allocation2 + $0x198] sm:$0xff]  ;;  %v951_v10 = vpack.c.bf16 %v299_v2, %v295_v1 }
  0x57   : > { %944 = vmatpush1.bf16.msra.mxu0 %v943_v50  ;;  %v308_v7 = vld [vmem:[#allocation2 + $0x1a8] sm:$0xff]  ;;  %v310_v9 = vld [vmem:[#allocation2 + $0x1b8] sm:$0xff]  ;;  %v1015_v11 = vpack.c.bf16 %v301_v5, %v297_v3  ;;  %v303_v13 = vld [vmem:[#allocation2 + $0x180] sm:$0xff] }
  0x58   : > { %1008 = vmatpush1.bf16.msra.mxu1 %v1007_v51  ;;  %946 = vmatprep.subr.bf16.mxu0 %v945_v52  ;;  %v953_v12 = vpack.c.bf16 %v308_v7, %v304_v6  ;;  %v307_v14 = vld [vmem:[#allocation2 + $0x1a0] sm:$0xff]  ;;  %v305_v15 = vld [vmem:[#allocation2 + $0x190] sm:$0xff]  ;;  %v1017_v16 = vpack.c.bf16 %v310_v9, %v306_v8  ;;  %v312_v18 = vld [vmem:[#allocation2 + $0x1c8] sm:$0xff] }
  0x59   : > { %1010 = vmatprep.subr.bf16.mxu1 %v1009_v56  ;;  %v309_v17 = vld [vmem:[#allocation2 + $0x1b0] sm:$0xff]  ;;  %v316_v19 = vld [vmem:[#allocation2 + $0x1e8] sm:$0xff]  ;;  %v314_v20 = vld [vmem:[#allocation2 + $0x1d8] sm:$0xff]  ;;  %v955_v22 = vpack.c.bf16 %v307_v14, %v303_v13 }
  0x5a   : > { %v318_v21 = vld [vmem:[#allocation2 + $0x1f8] sm:$0xff]  ;;  %v1019_v23 = vpack.c.bf16 %v309_v17, %v305_v15  ;;  %v957_v24 = vpack.c.bf16 %v316_v19, %v312_v18  ;;  %v311_v25 = vld [vmem:[#allocation2 + $0x1c0] sm:$0xff]  ;;  %v313_v27 = vld [vmem:[#allocation2 + $0x1d0] sm:$0xff] }
  0x5b   : > { %948 = vmatpush1.bf16.msra.mxu0 %v947_v62  ;;  %v315_v26 = vld [vmem:[#allocation2 + $0x1e0] sm:$0xff]  ;;  %v1021_v28 = vpack.c.bf16 %v318_v21, %v314_v20  ;;  %v317_v29 = vld [vmem:[#allocation2 + $0x1f0] sm:$0xff]  ;;  %v320_v30 = vld [vmem:[#allocation2 + $0x208] sm:$0xff] }
  0x5c   : > { %1012 = vmatpush1.bf16.msra.mxu1 %v1011_v63  ;;  %950 = vmatprep.subr.bf16.mxu0 %v949_v0  ;;  %v324_v31 = vld [vmem:[#allocation2 + $0x228] sm:$0xff]  ;;  %v322_v32 = vld [vmem:[#allocation2 + $0x218] sm:$0xff]  ;;  %v959_v34 = vpack.c.bf16 %v315_v26, %v311_v25  ;;  %v1023_v35 = vpack.c.bf16 %v317_v29, %v313_v27  ;;  %v319_v37 = vld [vmem:[#allocation2 + $0x200] sm:$0xff] }
  0x5d   : > { %1014 = vmatprep.subr.bf16.mxu1 %v1013_v4  ;;  %v326_v33 = vld [vmem:[#allocation2 + $0x238] sm:$0xff]  ;;  %v961_v36 = vpack.c.bf16 %v324_v31, %v320_v30  ;;  %v323_v38 = vld [vmem:[#allocation2 + $0x220] sm:$0xff]  ;;  %v321_v39 = vld [vmem:[#allocation2 + $0x210] sm:$0xff] }
  0x5e   : > { %v1025_v40 = vpack.c.bf16 %v326_v33, %v322_v32  ;;  %v325_v41 = vld [vmem:[#allocation2 + $0x230] sm:$0xff]  ;;  %v328_v42 = vld [vmem:[#allocation2 + $0x248] sm:$0xff]  ;;  %v330_v44 = vld [vmem:[#allocation2 + $0x258] sm:$0xff]  ;;  %v963_v46 = vpack.c.bf16 %v323_v38, %v319_v37 }
  0x5f   : > { %952 = vmatpush1.bf16.msra.mxu0 %v951_v10  ;;  %v332_v43 = vld [vmem:[#allocation2 + $0x268] sm:$0xff]  ;;  %v334_v45 = vld [vmem:[#allocation2 + $0x278] sm:$0xff]  ;;  %v1027_v47 = vpack.c.bf16 %v325_v41, %v321_v39  ;;  %v327_v49 = vld [vmem:[#allocation2 + $0x240] sm:$0xff] }
  0x60   : > { %1016 = vmatpush1.bf16.msra.mxu1 %v1015_v11  ;;  %954 = vmatprep.subr.bf16.mxu0 %v953_v12  ;;  %v965_v48 = vpack.c.bf16 %v332_v43, %v328_v42  ;;  %v331_v50 = vld [vmem:[#allocation2 + $0x260] sm:$0xff]  ;;  %v329_v51 = vld [vmem:[#allocation2 + $0x250] sm:$0xff]  ;;  %v1029_v52 = vpack.c.bf16 %v334_v45, %v330_v44  ;;  %v336_v54 = vld [vmem:[#allocation2 + $0x288] sm:$0xff] }
  0x61   : > { %1018 = vmatprep.subr.bf16.mxu1 %v1017_v16  ;;  %v333_v53 = vld [vmem:[#allocation2 + $0x270] sm:$0xff]  ;;  %v340_v55 = vld [vmem:[#allocation2 + $0x2a8] sm:$0xff]  ;;  %v338_v56 = vld [vmem:[#allocation2 + $0x298] sm:$0xff]  ;;  %v967_v58 = vpack.c.bf16 %v331_v50, %v327_v49 }
  0x62   : > { %v342_v57 = vld [vmem:[#allocation2 + $0x2b8] sm:$0xff]  ;;  %v1031_v59 = vpack.c.bf16 %v333_v53, %v329_v51  ;;  %v969_v60 = vpack.c.bf16 %v340_v55, %v336_v54  ;;  %v335_v61 = vld [vmem:[#allocation2 + $0x280] sm:$0xff]  ;;  %v337_v63 = vld [vmem:[#allocation2 + $0x290] sm:$0xff] }
  0x63   : > { %956 = vmatpush1.bf16.msra.mxu0 %v955_v22  ;;  %v339_v62 = vld [vmem:[#allocation2 + $0x2a0] sm:$0xff]  ;;  %v1033_v0 = vpack.c.bf16 %v342_v57, %v338_v56  ;;  %v341_v1 = vld [vmem:[#allocation2 + $0x2b0] sm:$0xff]  ;;  %v344_v2 = vld [vmem:[#allocation2 + $0x2c8] sm:$0xff] }
  0x64   : > { %1020 = vmatpush1.bf16.msra.mxu1 %v1019_v23  ;;  %958 = vmatprep.subr.bf16.mxu0 %v957_v24  ;;  %v348_v3 = vld [vmem:[#allocation2 + $0x2e8] sm:$0xff]  ;;  %v346_v4 = vld [vmem:[#allocation2 + $0x2d8] sm:$0xff]  ;;  %v971_v6 = vpack.c.bf16 %v339_v62, %v335_v61  ;;  %v343_v7 = vld [vmem:[#allocation2 + $0x2c0] sm:$0xff]  ;;  %v1035_v8 = vpack.c.bf16 %v341_v1, %v337_v63 }
  0x65   : > { %1022 = vmatprep.subr.bf16.mxu1 %v1021_v28  ;;  %v350_v5 = vld [vmem:[#allocation2 + $0x2f8] sm:$0xff]  ;;  %v973_v9 = vpack.c.bf16 %v348_v3, %v344_v2  ;;  %v347_v10 = vld [vmem:[#allocation2 + $0x2e0] sm:$0xff]  ;;  %v345_v11 = vld [vmem:[#allocation2 + $0x2d0] sm:$0xff] }
  0x66   : > { %v349_v12 = vld [vmem:[#allocation2 + $0x2f0] sm:$0xff]  ;;  %v1037_v13 = vpack.c.bf16 %v350_v5, %v346_v4  ;;  %v352_v14 = vld [vmem:[#allocation2 + $0x308] sm:$0xff]  ;;  %v354_v17 = vld [vmem:[#allocation2 + $0x318] sm:$0xff]  ;;  %v975_v19 = vpack.c.bf16 %v347_v10, %v343_v7 }
  0x67   : > { %960 = vmatpush1.bf16.msra.mxu0 %v959_v34  ;;  %v356_v15 = vld [vmem:[#allocation2 + $0x328] sm:$0xff]  ;;  %v358_v18 = vld [vmem:[#allocation2 + $0x338] sm:$0xff]  ;;  %v1039_v20 = vpack.c.bf16 %v349_v12, %v345_v11  ;;  %v351_v22 = vld [vmem:[#allocation2 + $0x300] sm:$0xff] }
  0x68   : > { %1024 = vmatpush1.bf16.msra.mxu1 %v1023_v35  ;;  %962 = vmatprep.subr.bf16.mxu0 %v961_v36  ;;  %v254_v16 = vld [vmem:[%s1358_s30 + $0x8] sm:$0xff]  ;;  %v977_v21 = vpack.c.bf16 %v356_v15, %v352_v14  ;;  %v355_v23 = vld [vmem:[#allocation2 + $0x320] sm:$0xff]  ;;  %v353_v24 = vld [vmem:[#allocation2 + $0x310] sm:$0xff]  ;;  %v1041_v25 = vpack.c.bf16 %v358_v18, %v354_v17 }
  0x69   : > { %1026 = vmatprep.subr.bf16.mxu1 %v1025_v40  ;;  %469 = vmatprep.mubr.f32.mxu0 %v254_v16  ;;  %v357_v26 = vld [vmem:[#allocation2 + $0x330] sm:$0xff]  ;;  %v360_v27 = vld [vmem:[#allocation2 + $0x348] sm:$0xff]  ;;  %v362_v29 = vld [vmem:[#allocation2 + $0x358] sm:$0xff]  ;;  %v979_v31 = vpack.c.bf16 %v355_v23, %v351_v22 }
  0x6a   : > { %540 = vmatprep.mubr.f32.mxu1 %v254_v16  ;;  %v364_v28 = vld [vmem:[#allocation2 + $0x368] sm:$0xff]  ;;  %v366_v30 = vld [vmem:[#allocation2 + $0x378] sm:$0xff]  ;;  %v1043_v32 = vpack.c.bf16 %v357_v26, %v353_v24  ;;  %v359_v34 = vld [vmem:[#allocation2 + $0x340] sm:$0xff] }
  0x6b   : > { %964 = vmatpush1.bf16.msra.mxu0 %v963_v46  ;;  %v981_v33 = vpack.c.bf16 %v364_v28, %v360_v27  ;;  %v363_v35 = vld [vmem:[#allocation2 + $0x360] sm:$0xff]  ;;  %v361_v36 = vld [vmem:[#allocation2 + $0x350] sm:$0xff]  ;;  %v1045_v37 = vpack.c.bf16 %v366_v30, %v362_v29  ;;  %v368_v39 = vld [vmem:[#allocation2 + $0x388] sm:$0xff] }
  0x6c   : > { %1028 = vmatpush1.bf16.msra.mxu1 %v1027_v47  ;;  %966 = vmatprep.subr.bf16.mxu0 %v965_v48  ;;  %v365_v38 = vld [vmem:[#allocation2 + $0x370] sm:$0xff]  ;;  %v372_v40 = vld [vmem:[#allocation2 + $0x3a8] sm:$0xff]  ;;  %v370_v41 = vld [vmem:[#allocation2 + $0x398] sm:$0xff]  ;;  %v983_v43 = vpack.c.bf16 %v363_v35, %v359_v34 }
  0x6d   : > { %1030 = vmatprep.subr.bf16.mxu1 %v1029_v52  ;;  %v374_v42 = vld [vmem:[#allocation2 + $0x3b8] sm:$0xff]  ;;  %v1047_v44 = vpack.c.bf16 %v365_v38, %v361_v36  ;;  %v985_v45 = vpack.c.bf16 %v372_v40, %v368_v39  ;;  %v367_v46 = vld [vmem:[#allocation2 + $0x380] sm:$0xff]  ;;  %v369_v48 = vld [vmem:[#allocation2 + $0x390] sm:$0xff] }
  0x6e   : > { %v371_v47 = vld [vmem:[#allocation2 + $0x3a0] sm:$0xff]  ;;  %v1049_v49 = vpack.c.bf16 %v374_v42, %v370_v41  ;;  %v373_v50 = vld [vmem:[#allocation2 + $0x3b0] sm:$0xff]  ;;  %v376_v51 = vld [vmem:[#allocation2 + $0x3c8] sm:$0xff] }
  0x6f   : > { %968 = vmatpush1.bf16.msra.mxu0 %v967_v58  ;;  %v380_v52 = vld [vmem:[#allocation2 + $0x3e8] sm:$0xff]  ;;  %v378_v53 = vld [vmem:[#allocation2 + $0x3d8] sm:$0xff]  ;;  %v987_v55 = vpack.c.bf16 %v371_v47, %v367_v46  ;;  %v1051_v56 = vpack.c.bf16 %v373_v50, %v369_v48  ;;  %v375_v58 = vld [vmem:[#allocation2 + $0x3c0] sm:$0xff] }
  0x70   : > { %1032 = vmatpush1.bf16.msra.mxu1 %v1031_v59  ;;  %970 = vmatprep.subr.bf16.mxu0 %v969_v60  ;;  %v382_v54 = vld [vmem:[#allocation2 + $0x3f8] sm:$0xff]  ;;  %v989_v57 = vpack.c.bf16 %v380_v52, %v376_v51  ;;  %v379_v59 = vld [vmem:[#allocation2 + $0x3e0] sm:$0xff]  ;;  %v377_v60 = vld [vmem:[#allocation2 + $0x3d0] sm:$0xff] }
  0x71   : > { %1034 = vmatprep.subr.bf16.mxu1 %v1033_v0  ;;  %v1053_v61 = vpack.c.bf16 %v382_v54, %v378_v53  ;;  %v381_v62 = vld [vmem:[#allocation2 + $0x3f0] sm:$0xff]  ;;  %v567_v63 = vld [vmem:[#allocation4 + $0x80] sm:$0xff]  ;;  %v568_v0 = vld [vmem:[#allocation4 + $0x88] sm:$0xff]  ;;  %v991_v3 = vpack.c.bf16 %v379_v59, %v375_v58 }
  0x72   : > { %v599_v1 = vld [vmem:[#allocation4 + $0x180] sm:$0xff]  ;;  %v600_v2 = vld [vmem:[#allocation4 + $0x188] sm:$0xff]  ;;  %v1055_v4 = vpack.c.bf16 %v381_v62, %v377_v60  ;;  %v1057_v5 = vpack.c.bf16 %v568_v0, %v567_v63  ;;  %v569_v11 = vld [vmem:[#allocation4 + $0x90] sm:$0xff] }
  0x73   : > { %972 = vmatpush1.bf16.msra.mxu0 %v971_v6  ;;  %v551_v6 = vld [vmem:[#allocation4] sm:$0xff]  ;;  %v552_v7 = vld [vmem:[#allocation4 + $0x8] sm:$0xff]  ;;  %v570_v12 = vld [vmem:[#allocation4 + $0x98] sm:$0xff] }
  0x74   : > { %1036 = vmatpush1.bf16.msra.mxu1 %v1035_v8  ;;  %974 = vmatprep.subr.bf16.mxu0 %v973_v9  ;;  %v583_v8 = vld [vmem:[#allocation4 + $0x100] sm:$0xff]  ;;  %v1089_v9 = vpack.c.bf16 %v600_v2, %v599_v1  ;;  %v584_v10 = vld [vmem:[#allocation4 + $0x108] sm:$0xff]  ;;  %v602_v14 = vld [vmem:[#allocation4 + $0x198] sm:$0xff]  ;;  %v1059_v16 = vpack.c.bf16 %v552_v7, %v551_v6  ;;  %v1061_v18 = vpack.c.bf16 %v570_v12, %v569_v11 }
  0x75   : > { %1038 = vmatprep.subr.bf16.mxu1 %v1037_v13  ;;  %v601_v13 = vld [vmem:[#allocation4 + $0x190] sm:$0xff]  ;;  %v253_v15 = vld [vmem:[%s1358_s30] sm:$0xff]  ;;  %v1091_v17 = vpack.c.bf16 %v584_v10, %v583_v8  ;;  %v586_v23 = vld [vmem:[#allocation4 + $0x118] sm:$0xff] }
  0x76   : > { %v1093_v22 = vpack.c.bf16 %v602_v14, %v601_v13  ;;  %v571_v24 = vld [vmem:[#allocation4 + $0xa0] sm:$0xff]  ;;  %v604_v27 = vld [vmem:[#allocation4 + $0x1a8] sm:$0xff]  ;;  %v573_v36 = vld [vmem:[#allocation4 + $0xb0] sm:$0xff] }
  0x77   : > { %976 = vmatpush1.bf16.msra.mxu0 %v975_v19  ;;  %v553_v19 = vld [vmem:[#allocation4 + $0x10] sm:$0xff]  ;;  %v603_v26 = vld [vmem:[#allocation4 + $0x1a0] sm:$0xff]  ;;  %v588_v35 = vld [vmem:[#allocation4 + $0x128] sm:$0xff] }
  0x78   : > { %1040 = vmatpush1.bf16.msra.mxu1 %v1039_v20  ;;  %978 = vmatprep.subr.bf16.mxu0 %v977_v21  ;;  %v554_v20 = vld [vmem:[#allocation4 + $0x18] sm:$0xff]  ;;  %v585_v21 = vld [vmem:[#allocation4 + $0x110] sm:$0xff]  ;;  %v1097_v34 = vpack.c.bf16 %v604_v27, %v603_v26  ;;  %v575_v48 = vld [vmem:[#allocation4 + $0xc0] sm:$0xff] }
  0x79   : > { %1042 = vmatprep.subr.bf16.mxu1 %v1041_v25  ;;  %v572_v25 = vld [vmem:[#allocation4 + $0xa8] sm:$0xff]  ;;  %v1063_v28 = vpack.c.bf16 %v554_v20, %v553_v19  ;;  %v1095_v29 = vpack.c.bf16 %v586_v23, %v585_v21  ;;  %v605_v38 = vld [vmem:[#allocation4 + $0x1b0] sm:$0xff]  ;;  %v606_v39 = vld [vmem:[#allocation4 + $0x1b8] sm:$0xff] }
  0x7a   : > { %v1065_v30 = vpack.c.bf16 %v572_v25, %v571_v24  ;;  %v1101_v46 = vpack.c.bf16 %v606_v39, %v605_v38  ;;  %v590_v47 = vld [vmem:[#allocation4 + $0x138] sm:$0xff]  ;;  %v607_v50 = vld [vmem:[#allocation4 + $0x1c0] sm:$0xff]  ;;  %v608_v51 = vld [vmem:[#allocation4 + $0x1c8] sm:$0xff] }
  0x7b   : > { %980 = vmatpush1.bf16.msra.mxu0 %v979_v31  ;;  %v555_v31 = vld [vmem:[#allocation4 + $0x20] sm:$0xff]  ;;  %v1105_v58 = vpack.c.bf16 %v608_v51, %v607_v50  ;;  %v592_v59 = vld [vmem:[#allocation4 + $0x148] sm:$0xff]  ;;  %v577_v60 = vld [vmem:[#allocation4 + $0xd0] sm:$0xff] }
  0x7c   : > { %1044 = vmatpush1.bf16.msra.mxu1 %v1043_v32  ;;  %982 = vmatprep.subr.bf16.mxu0 %v981_v33  ;;  %v556_v32 = vld [vmem:[#allocation4 + $0x28] sm:$0xff]  ;;  %v587_v33 = vld [vmem:[#allocation4 + $0x120] sm:$0xff]  ;;  %v609_v62 = vld [vmem:[#allocation4 + $0x1d0] sm:$0xff] }
  0x7d   : > { %1046 = vmatprep.subr.bf16.mxu1 %v1045_v37  ;;  %v574_v37 = vld [vmem:[#allocation4 + $0xb8] sm:$0xff]  ;;  %v1067_v40 = vpack.c.bf16 %v556_v32, %v555_v31  ;;  %v1099_v41 = vpack.c.bf16 %v588_v35, %v587_v33  ;;  %v579_v8 = vld [vmem:[#allocation4 + $0xe0] sm:$0xff]  ;;  %v612_v11 = vld [vmem:[#allocation4 + $0x1e8] sm:$0xff] }
  0x7e   : > { %v1069_v42 = vpack.c.bf16 %v574_v37, %v573_v36  ;;  %v610_v63 = vld [vmem:[#allocation4 + $0x1d8] sm:$0xff]  ;;  %v611_v10 = vld [vmem:[#allocation4 + $0x1e0] sm:$0xff]  ;;  %v596_v20 = vld [vmem:[#allocation4 + $0x168] sm:$0xff] }
  0x7f   : > { %984 = vmatpush1.bf16.msra.mxu0 %v983_v43  ;;  %v557_v43 = vld [vmem:[#allocation4 + $0x30] sm:$0xff]  ;;  %v1109_v6 = vpack.c.bf16 %v610_v63, %v609_v62  ;;  %v594_v7 = vld [vmem:[#allocation4 + $0x158] sm:$0xff]  ;;  %v383_v37 = vld [vmem:[%s1377_s2] sm:$0xf] }
  0x80   : > { %1048 = vmatpush1.bf16.msra.mxu1 %v1047_v44  ;;  %986 = vmatprep.subr.bf16.mxu0 %v985_v45  ;;  %v558_v44 = vld [vmem:[#allocation4 + $0x38] sm:$0xff]  ;;  %v589_v45 = vld [vmem:[#allocation4 + $0x130] sm:$0xff] }
  0x81   : > { %1050 = vmatprep.subr.bf16.mxu1 %v1049_v49  ;;  %v576_v49 = vld [vmem:[#allocation4 + $0xc8] sm:$0xff]  ;;  %v1071_v52 = vpack.c.bf16 %v558_v44, %v557_v43  ;;  %v1103_v53 = vpack.c.bf16 %v590_v47, %v589_v45  ;;  %v582_v23 = vld [vmem:[#allocation4 + $0xf8] sm:$0xff]  ;;  %v613_v24 = vld [vmem:[#allocation4 + $0x1f0] sm:$0xff] }
  0x82   : > { %v1073_v54 = vpack.c.bf16 %v576_v49, %v575_v48  ;;  %v614_v26 = vld [vmem:[#allocation4 + $0x1f8] sm:$0xff]  ;;  %v565_v27 = vld [vmem:[#allocation4 + $0x70] sm:$0xff] }
  0x83   : > { %988 = vmatpush1.bf16.msra.mxu0 %v987_v55  ;;  %v559_v55 = vld [vmem:[#allocation4 + $0x40] sm:$0xff]  ;;  %v597_v31 = vld [vmem:[#allocation4 + $0x170] sm:$0xff]  ;;  %v598_v32 = vld [vmem:[#allocation4 + $0x178] sm:$0xff] }
  0x84   : > { %1052 = vmatpush1.bf16.msra.mxu1 %v1051_v56  ;;  %990 = vmatprep.subr.bf16.mxu0 %v989_v57  ;;  %v560_v56 = vld [vmem:[#allocation4 + $0x48] sm:$0xff]  ;;  %v591_v57 = vld [vmem:[#allocation4 + $0x140] sm:$0xff]  ;;  %v1119_v33 = vpack.c.bf16 %v598_v32, %v597_v31 }
  0x85   : > { %1054 = vmatprep.subr.bf16.mxu1 %v1053_v61  ;;  %v578_v61 = vld [vmem:[#allocation4 + $0xd8] sm:$0xff]  ;;  %v1075_v0 = vpack.c.bf16 %v560_v56, %v559_v55  ;;  %v1107_v1 = vpack.c.bf16 %v592_v59, %v591_v57  ;;  %v855_v59 = vld [vmem:[%s1379_s4] ss:$0 sm:$0xff] }
  0x86   : > { %v1077_v2 = vpack.c.bf16 %v578_v61, %v577_v60 }
  0x87   : > { %992 = vmatpush1.bf16.msra.mxu0 %v991_v3  ;;  %v561_v3 = vld [vmem:[#allocation4 + $0x50] sm:$0xff] }
  0x88   : > { %1056 = vmatpush1.bf16.msra.mxu1 %v1055_v4  ;;  %1058 = vmatprep.subr.bf16.mxu0 %v1057_v5  ;;  %v562_v4 = vld [vmem:[#allocation4 + $0x58] sm:$0xff]  ;;  %v593_v5 = vld [vmem:[#allocation4 + $0x150] sm:$0xff] }
  0x89   : > { %1090 = vmatprep.subr.bf16.mxu1 %v1089_v9  ;;  %v580_v9 = vld [vmem:[#allocation4 + $0xe8] sm:$0xff]  ;;  %v1079_v12 = vpack.c.bf16 %v562_v4, %v561_v3  ;;  %v1111_v13 = vpack.c.bf16 %v594_v7, %v593_v5 }
  0x8a   : > { %470 = vmatmul.mubr.f32.vlgmr.msra.gmra.mrb[0].mxu0 %v253_v15  ;;  %v1081_v14 = vpack.c.bf16 %v580_v9, %v579_v8 }
  0x8b   : > { %541 = vmatmul.mubr.f32.vlgmr.msra.gmra.mrb[0].mxu1 %v253_v15  ;;  %1060 = vmatpush3.bf16.msra.mxu0 %v1059_v16  ;;  %v1113_v15 = vpack.c.bf16 %v612_v11, %v611_v10  ;;  %v563_v16 = vld [vmem:[#allocation4 + $0x60] sm:$0xff] }
  0x8c   : > { %1092 = vmatpush3.bf16.msra.mxu1 %v1091_v17  ;;  %1062 = vmatprep.subr.bf16.mxu0 %v1061_v18  ;;  %v564_v17 = vld [vmem:[#allocation4 + $0x68] sm:$0xff]  ;;  %v595_v18 = vld [vmem:[#allocation4 + $0x160] sm:$0xff] }
  0x8d   : > { %1094 = vmatprep.subr.bf16.mxu1 %v1093_v22  ;;  %v1083_v19 = vpack.c.bf16 %v564_v17, %v563_v16  ;;  %v1115_v21 = vpack.c.bf16 %v596_v20, %v595_v18  ;;  %v581_v22 = vld [vmem:[#allocation4 + $0xf0] sm:$0xff] }
  0x8e   : > { %v1085_v25 = vpack.c.bf16 %v582_v23, %v581_v22 }
  0x8f   : > { %1064 = vmatpush3.bf16.msra.mxu0 %v1063_v28  ;;  %v566_v28 = vld [vmem:[#allocation4 + $0x78] sm:$0xff] }
  0x90   : > { %1096 = vmatpush3.bf16.msra.mxu1 %v1095_v29  ;;  %1066 = vmatprep.subr.bf16.mxu0 %v1065_v30  ;;  %v1117_v29 = vpack.c.bf16 %v614_v26, %v613_v24  ;;  %v1087_v30 = vpack.c.bf16 %v566_v28, %v565_v27 }
  0x91   : > { %1098 = vmatprep.subr.bf16.mxu1 %v1097_v34  ;;  %v385_v34 = vlaneseq }
  0x93   : > { %1068 = vmatpush3.bf16.msra.mxu0 %v1067_v40  ;;  %v386_v35 = vshrl.u32 %v385_v34, 7 }
  0x94   : > { %1100 = vmatpush3.bf16.msra.mxu1 %v1099_v41  ;;  %1070 = vmatprep.subr.bf16.mxu0 %v1069_v42 }
  0x95   : > { %1102 = vmatprep.subr.bf16.mxu1 %v1101_v46  ;;  %v387_v36 = vsub.s32 0, %v386_v35  ;;  %v395_v38 = vsub.s32 2, %v386_v35  ;;  %v391_v39 = vsub.s32 1, %v386_v35  ;;  %v399_v40 = vsub.s32 3, %v386_v35 }
  0x97   : > { %1072 = vmatpush3.bf16.msra.mxu0 %v1071_v52  ;;  %v388_v41 = vrot.slane %v383_v37, %v387_v36  ;;  %v396_v42 = vrot.slane %v383_v37, %v395_v38  ;;  %v392_v43 = vrot.slane %v383_v37, %v391_v39  ;;  %v400_v44 = vrot.slane %v383_v37, %v399_v40 }
  0x98   : > { %1104 = vmatpush3.bf16.msra.mxu1 %v1103_v53  ;;  %1074 = vmatprep.subr.bf16.mxu0 %v1073_v54 }
  0x99   : > { %1106 = vmatprep.subr.bf16.mxu1 %v1105_v58 }
  0x9b   : > { %1076 = vmatpush3.bf16.msra.mxu0 %v1075_v0 }
  0x9c   : > { %1108 = vmatpush3.bf16.msra.mxu1 %v1107_v1  ;;  %1078 = vmatprep.subr.bf16.mxu0 %v1077_v2 }
  0x9d   : > { %1110 = vmatprep.subr.bf16.mxu1 %v1109_v6 }
  0x9f   : > { %1080 = vmatpush3.bf16.msra.mxu0 %v1079_v12 }
  0xa0   : > { %1112 = vmatpush3.bf16.msra.mxu1 %v1111_v13  ;;  %1082 = vmatprep.subr.bf16.mxu0 %v1081_v14 }
  0xa1   : > { %1114 = vmatprep.subr.bf16.mxu1 %v1113_v15 }
  0xa3   : > { %1084 = vmatpush3.bf16.msra.mxu0 %v1083_v19 }
  0xa4   : > { %1116 = vmatpush3.bf16.msra.mxu1 %v1115_v21  ;;  %1086 = vmatprep.subr.bf16.mxu0 %v1085_v25 }
  0xa5   : > { %1118 = vmatprep.subr.bf16.mxu1 %v1117_v29 }
  0xa7   : > { %1088 = vmatpush3.bf16.msra.mxu0 %v1087_v30 }
  0xa8   : > { %1120 = vmatpush3.bf16.msra.mxu1 %v1119_v33 }
 0x15d   : > { %v471_v45 = vpop.f32.mrb[0].mxu0 }
 0x15e   : > { %v472_v46 = vadd.f32 %v471_v45, %v388_v41  ;;  %v542_v47 = vpop.f32.mrb[0].mxu1  ;;  %v473_v48 = vpop.f32.mrb[1].mxu0 }
 0x15f   : > { %v543_v49 = vadd.f32 %v542_v47, %v396_v42  ;;  %v474_v50 = vadd.f32 %v473_v48, %v392_v43  ;;  %v544_v51 = vpop.f32.mrb[1].mxu1 }
 0x160   : > { %v545_v52 = vadd.f32 %v544_v51, %v400_v44  ;;  %v547_v55 = vmax.f32 %v472_v46, 0.0 }
 0x161   : > { %v549_v53 = vmax.f32 %v543_v49, 0.0  ;;  %v548_v54 = vmax.f32 %v474_v50, 0.0 }
 0x162   : > { %v550_v56 = vmax.f32 %v545_v52, 0.0 }
 0x163   : > { %686 = vmatprep.mubr.f32.mxu0 %v548_v54 }
 0x164   : > { %756 = vmatprep.mubr.f32.mxu1 %v550_v56  ;;  %687 = vmatmul.mubr.f32.vlgmr.msra.gmra.mrb[2].mxu0 %v547_v55 }
 0x165   : > { %757 = vmatmul.mubr.f32.vlgmr.msra.gmra.mrb[2].mxu1 %v549_v53 }
 0x237   : > { %v891_v57 = vpop.f32.mrb[2].mxu0 }
 0x238   : > { %v926_v58 = vpop.f32.mrb[2].mxu1  ;;  %v892_v60 = vpop.f32.mrb[3].mxu0 }
 0x239   : > { %v893_v61 = vadd.f32 %v892_v60, %v891_v57  ;;  %v927_v62 = vpop.f32.mrb[3].mxu1 }
 0x23a   : > { %v928_v63 = vadd.f32 %v927_v62, %v926_v58 }
 0x23b   : > { %v689_v0 = vadd.f32 %v893_v61, %v855_v59 }
 0x23d   : > { %v759_v1 = vadd.f32 %v928_v63, %v689_v0 }
 0x23f   : > { %v762_v2 = vsub.f32 0.0, %v759_v1 }
 0x241   : > { %v763_v3 = vmul.f32 1.442695, %v762_v2 }
 0x243   : > { %1154 = vpow2.f32 %v763_v3 }
 0x24d   : > { %v1155_v4 = vpop.eup %1154 }
 0x24e   : > { %v765_v5 = vadd.f32 1.0, %v1155_v4 }
 0x250   : > { %1156 = vrcp.f32 %v765_v5 }
 0x25a   : > { %v1157_v6 = vpop.eup %1156 }
 0x25b   : > { %767 = vst [vmem:[%s252_s13] sm:$0xff] %v1157_v6 }
 0x25c PF: > { %s17_s18 = sadd.s32 1, %s1228_s18  }
 0x25d   : > { %p14_p9 = scmp.ge.s32.totalorder %s17_s18, 4  }
 0x25f   :  { %16 = sbr.rel (!%p14_p9) target bundleno = 2 (0x2), region = 79 }
 0x266   :  { %787 = vsyncpa [#allocation3], 1 }
 0x267   :  { %789 = vsyncpa [#allocation3 + $0x1], 1 }
 0x268   :  { %790 = vsyncpa [#allocation5], 1 }

</bundles_post_ra>
